<compile_context>
chip_gen: v7x
topology: tpu7x:2x2x1
jax: 0.10.0
libtpu: 0.0.40
codegen_flags: <defaults>
</compile_context>

<pallas_src>
import numpy as np
import jax
import jax.numpy as jnp
from jax import lax
from jax.experimental import pallas as pl
from jax.experimental.pallas import tpu as pltpu


def _round_up(x, m):
    return (x + m - 1) // m * m


# ---------------------------------------------------------------------------
# Pallas kernel 1: M/K-tiled bf16 matmul with fused (folded-BN) affine,
# optional residual add and optional ReLU.  f32 accumulation in VMEM scratch.
#   grid = (M tiles, K tiles) with K innermost (accumulator pattern),
#   M marked "parallel" (v7x 2-TC sharding), K "arbitrary".
# ---------------------------------------------------------------------------
def fused_matmul(a, b, scale, shift, *, relu, residual=None,
                 out_dtype=jnp.bfloat16, tm=256, tk=256):
    """relu_opt((a @ b) * scale + shift [+ residual]) in a Pallas kernel."""
    M, K = a.shape
    Nc = b.shape[1]
    tm_eff = min(tm, _round_up(M, 8))
    tk_eff = min(tk, _round_up(K, 128))
    Mp = _round_up(M, tm_eff)
    Kp = _round_up(K, tk_eff)
    Np = _round_up(Nc, 128)

    a_p = jnp.pad(a.astype(jnp.bfloat16), ((0, Mp - M), (0, Kp - K)))
    b_p = jnp.pad(b.astype(jnp.bfloat16), ((0, Kp - K), (0, Np - Nc)))
    scale_p = jnp.pad(scale.astype(jnp.float32), (0, Np - Nc)).reshape(1, Np)
    shift_p = jnp.pad(shift.astype(jnp.float32), (0, Np - Nc)).reshape(1, Np)

    has_res = residual is not None
    if has_res:
        res_p = jnp.pad(residual.astype(jnp.bfloat16),
                        ((0, Mp - M), (0, Np - Nc)))

    def kernel(*refs):
        if has_res:
            a_ref, b_ref, sc_ref, sh_ref, r_ref, o_ref, acc_ref = refs
        else:
            a_ref, b_ref, sc_ref, sh_ref, o_ref, acc_ref = refs
            r_ref = None
        k = pl.program_id(1)

        @pl.when(k == 0)
        def _init():
            acc_ref[...] = jnp.zeros_like(acc_ref)

        acc_ref[...] += jnp.dot(a_ref[...], b_ref[...],
                                preferred_element_type=jnp.float32)

        @pl.when(k == pl.num_programs(1) - 1)
        def _epilogue():
            r = acc_ref[...] * sc_ref[...] + sh_ref[...]       # f32 epilogue
            if r_ref is not None:
                r = r + r_ref[...].astype(jnp.float32)
            if relu:
                r = jnp.maximum(r, 0.0)
            o_ref[...] = r.astype(o_ref.dtype)

    in_specs = [
        pl.BlockSpec((tm_eff, tk_eff), lambda m, k: (m, k)),
        pl.BlockSpec((tk_eff, Np), lambda m, k: (k, 0)),
        pl.BlockSpec((1, Np), lambda m, k: (0, 0)),
        pl.BlockSpec((1, Np), lambda m, k: (0, 0)),
    ]
    inputs = [a_p, b_p, scale_p, shift_p]
    if has_res:
        in_specs.append(pl.BlockSpec((tm_eff, Np), lambda m, k: (m, 0)))
        inputs.append(res_p)

    out = pl.pallas_call(
        kernel,
        out_shape=jax.ShapeDtypeStruct((Mp, Np), out_dtype),
        grid_spec=pltpu.PrefetchScalarGridSpec(
            num_scalar_prefetch=0,
            grid=(Mp // tm_eff, Kp // tk_eff),
            in_specs=in_specs,
            out_specs=pl.BlockSpec((tm_eff, Np), lambda m, k: (m, 0)),
            scratch_shapes=[pltpu.VMEM((tm_eff, Np), jnp.float32)],
        ),
        compiler_params=pltpu.CompilerParams(
            dimension_semantics=("parallel", "arbitrary")),
    )(*inputs)
    return out[:M, :Nc]


# ---------------------------------------------------------------------------
# Pallas kernel 2: MIL head.
#   - instance scores y_ins = y @ w + b  (Linear(512,1), VPU mul + lane reduce)
#   - per-bag max of scores (bag prediction)
#   - per-bag argmax-row gather of the 512-d feature (bag_feat) as one
#     vectorized masked-sum (no per-bag Python loop / stores).
# Whole arrays fit in VMEM (small N), so a single grid step with full blocks.
# ---------------------------------------------------------------------------
def _mil_head_kernel(y_ref, w_ref, b_ref, maskT_ref, yins_ref, bags_ref, feat_ref):
    y = y_ref[...]                                                # (N, D) f32
    scores = jnp.sum(y * w_ref[...], axis=1, keepdims=True) + b_ref[...]   # (N, 1)
    yins_ref[...] = scores

    maskT = maskT_ref[...]                                        # (N, B)
    n_rows = maskT.shape[0]
    neg_inf = jnp.full(maskT.shape, -jnp.inf, jnp.float32)
    s_masked = jnp.where(maskT > 0.5, scores, neg_inf)            # (N, B)

    bag_max = jnp.max(s_masked, axis=0, keepdims=True)            # (1, B)
    bags_ref[...] = bag_max

    # first maximal row per bag (matches torch.max(dim=0)[1] tie-breaking)
    row_ids = lax.broadcasted_iota(jnp.int32, maskT.shape, 0)     # (N, B)
    cand = jnp.where(s_masked == bag_max, row_ids, n_rows)
    best = jnp.min(cand, axis=0, keepdims=True)                   # (1, B)
    onehot = (row_ids == best).astype(jnp.float32)                # (N, B)

    # gather the argmax feature row per bag: single vectorized masked-sum
    feat_ref[...] = jnp.sum(onehot[:, :, None] * y[:, None, :], axis=0)  # (B, D)


def mil_head(y, reg_w, reg_b, len_list):
    N, D = y.shape
    B = len(len_list)
    maskT = np.zeros((N, B), np.float32)
    s = 0
    for bi, l in enumerate(len_list):
        maskT[s:s + l, bi] = 1.0
        s += l
    maskT = jnp.asarray(maskT)
    w_row = jnp.reshape(reg_w, (1, D)).astype(jnp.float32)
    b_arr = jnp.reshape(reg_b, (1, 1)).astype(jnp.float32)

    y_ins, bags, bag_feat = pl.pallas_call(
        _mil_head_kernel,
        out_shape=(
            jax.ShapeDtypeStruct((N, 1), jnp.float32),
            jax.ShapeDtypeStruct((1, B), jnp.float32),
            jax.ShapeDtypeStruct((B, D), jnp.float32),
        ),
        grid_spec=pltpu.PrefetchScalarGridSpec(
            num_scalar_prefetch=0,
            grid=(1,),
            in_specs=[
                pl.BlockSpec((N, D), lambda i: (0, 0)),
                pl.BlockSpec((1, D), lambda i: (0, 0)),
                pl.BlockSpec((1, 1), lambda i: (0, 0)),
                pl.BlockSpec((N, B), lambda i: (0, 0)),
            ],
            out_specs=(
                pl.BlockSpec((N, 1), lambda i: (0, 0)),
                pl.BlockSpec((1, B), lambda i: (0, 0)),
                pl.BlockSpec((B, D), lambda i: (0, 0)),
            ),
        ),
    )(y, w_row, b_arr, maskT)
    return y_ins, bags[0], bag_feat


# ---------------------------------------------------------------------------
# ResNet18-style feature extractor (inference), channels-last (NHWC) bf16.
# Conv GEMMs go through the Pallas fused matmul kernel (BN folded, residual
# add + ReLU fused into the epilogue of each block's second conv).  im2col /
# maxpool are plain-JAX glue (lane-contiguous slicing / data movement only).
# ---------------------------------------------------------------------------
def _im2col_nhwc(x, kh, kw, stride, padding):
    n, h, w, c = x.shape
    if padding:
        x = jnp.pad(x, ((0, 0), (padding, padding), (padding, padding), (0, 0)))
    hp, wp = h + 2 * padding, w + 2 * padding
    ho = (hp - kh) // stride + 1
    wo = (wp - kw) // stride + 1
    cols = []
    for i in range(kh):
        for j in range(kw):
            cols.append(x[:, i:i + stride * ho:stride, j:j + stride * wo:stride, :])
    patches = jnp.stack(cols, axis=3)                  # (n, ho, wo, kh*kw, c)
    patches = patches.reshape(n * ho * wo, kh * kw * c)
    return patches, ho, wo


def conv_bn(x, w, bn, stride, padding, relu, residual=None):
    """x: (n,h,w,cin) NHWC bf16; w: PyTorch (cout,cin,kh,kw). Returns NHWC bf16."""
    n = x.shape[0]
    cout, cin, kh, kw = w.shape
    patches, ho, wo = _im2col_nhwc(x, kh, kw, stride, padding)
    # weight matrix matching (kh, kw, cin) im2col column order
    w_mat = jnp.transpose(w, (2, 3, 1, 0)).reshape(kh * kw * cin, cout)
    scale = bn['gamma'] / jnp.sqrt(bn['var'] + 1e-5)
    shift = bn['beta'] - bn['mean'] * scale
    out = fused_matmul(patches, w_mat, scale, shift,
                       relu=relu, residual=residual)   # (n*ho*wo, cout) bf16
    return out.reshape(n, ho, wo, cout)


def basic_block(x, blk):
    out = conv_bn(x, blk['conv1'], blk['bn1'],
                  stride=blk['stride'], padding=1, relu=True)
    if 'ds_conv' in blk:
        identity = conv_bn(x, blk['ds_conv'], blk['ds_bn'],
                           stride=blk['stride'], padding=0, relu=False)
    else:
        identity = x
    n, ho, wo, cout = out.shape
    res = identity.reshape(n * ho * wo, cout)
    # conv2 + BN + residual add + ReLU, all fused in the Pallas epilogue
    out = conv_bn(out, blk['conv2'], blk['bn2'],
                  stride=1, padding=1, relu=True, residual=res)
    # TODO(synk): layer3/4 (M = 8-32 rows) could be fully block-fused into a
    #             single pallas_call to cut dispatch overhead further.
    return out


def resnet18_features(p, x_nchw):
    # single NCHW -> NHWC transpose at entry, activations stay NHWC bf16
    x = jnp.transpose(x_nchw, (0, 2, 3, 1)).astype(jnp.bfloat16)
    x = conv_bn(x, p['conv1'], p['bn1'], stride=2, padding=3, relu=True)
    # maxpool 3x3 / stride 2 / pad 1 (plain-JAX glue, NHWC)
    x = lax.reduce_window(x, jnp.array(-jnp.inf, x.dtype), lax.max,
                          (1, 3, 3, 1), (1, 2, 2, 1),
                          ((0, 0), (1, 1), (1, 1), (0, 0)))
    for layer in p['layers']:
        for blk in layer:
            x = basic_block(x, blk)
    # adaptive avg pool (1,1) + flatten -> (N, 512), f32 for the MIL head
    return jnp.mean(x.astype(jnp.float32), axis=(1, 2))


# ---------------------------------------------------------------------------
# Deterministic parameter init (pretrained weights are NOT loaded).
# ---------------------------------------------------------------------------
def _conv_w(key, cout, cin, k):
    fan_in = cin * k * k
    return jax.random.normal(key, (cout, cin, k, k), jnp.float32) * np.sqrt(2.0 / fan_in)


def _bn_p(c):
    return {'gamma': jnp.ones((c,), jnp.float32),
            'beta': jnp.zeros((c,), jnp.float32),
            'mean': jnp.zeros((c,), jnp.float32),
            'var': jnp.ones((c,), jnp.float32)}


def init_backbone(key):
    ks = iter(jax.random.split(key, 64))
    p = {'conv1': _conv_w(next(ks), 64, 3, 7), 'bn1': _bn_p(64), 'layers': []}
    cfg = [(64, 64, 1), (64, 128, 2), (128, 256, 2), (256, 512, 2)]
    for cin, cout, stride in cfg:
        blocks = []
        for b in range(2):
            s = stride if b == 0 else 1
            bin_ = cin if b == 0 else cout
            blk = {'stride': s,
                   'conv1': _conv_w(next(ks), cout, bin_, 3), 'bn1': _bn_p(cout),
                   'conv2': _conv_w(next(ks), cout, cout, 3), 'bn2': _bn_p(cout)}
            if s != 1 or bin_ != cout:
                blk['ds_conv'] = _conv_w(next(ks), cout, bin_, 1)
                blk['ds_bn'] = _bn_p(cout)
            blocks.append(blk)
        p['layers'].append(blocks)
    return p


# ---------------------------------------------------------------------------
# Full forward, mirroring Output_max.forward
# ---------------------------------------------------------------------------
def output_max_forward(params, x, len_list):
    y = resnet18_features(params['backbone'], x)                  # (N, 512) f32
    y_ins, y_bags, y_bag_feat = mil_head(y, params['reg_w'], params['reg_b'], len_list)
    # ins_score: host-side per-bag numpy slices (mirrors .cpu().detach().numpy())
    y_ins_np = np.asarray(y_ins)
    ins_score = []
    s = 0
    for l in len_list:
        ins_score.append(y_ins_np[s:s + l])
        s += l
    return {'bag': y_bags, 'ins': y_ins, 'ins_feats': y,
            'ins_score': ins_score, 'bag_feat': y_bag_feat}


if __name__ == "__main__":
    key = jax.random.PRNGKey(0)
    k1, k2, k3, k4 = jax.random.split(key, 4)

    len_list = [3, 2, 3]          # bag lengths; total instances N = 8
    N = sum(len_list)
    x = jax.random.normal(k1, (N, 3, 32, 32), jnp.float32)   # NCHW, like PyTorch

    bound = 1.0 / np.sqrt(512.0)
    params = {
        'backbone': init_backbone(k2),
        'reg_w': jax.random.uniform(k3, (1, 512), jnp.float32, -bound, bound),
        'reg_b': jax.random.uniform(k4, (1,), jnp.float32, -bound, bound),
    }

    out = output_max_forward(params, x, len_list)
    jax.block_until_ready((out['bag'], out['ins'], out['ins_feats'], out['bag_feat']))

    # shape checks (match PyTorch semantics)
    assert out['ins_feats'].shape == (N, 512)
    assert out['ins'].shape == (N, 1)
    assert out['bag'].shape == (len(len_list),)
    assert out['bag_feat'].shape == (len(len_list), 512)
    assert [a.shape for a in out['ins_score']] == [(l, 1) for l in len_list]

    # numerical check of the MIL-head Pallas kernel against pure numpy
    y_np = np.asarray(out['ins_feats'])
    ins_ref = y_np @ np.asarray(params['reg_w']).T + np.asarray(params['reg_b'])
    assert np.allclose(np.asarray(out['ins']), ins_ref, rtol=1e-4, atol=1e-4)
    s = 0
    for bi, l in enumerate(len_list):
        seg = ins_ref[s:s + l, 0]
        assert np.allclose(np.asarray(out['bag'])[bi], seg.max(), rtol=1e-4, atol=1e-4)
        idx = int(np.argmax(seg))
        assert np.allclose(np.asarray(out['bag_feat'])[bi], y_np[s + idx],
                           rtol=1e-4, atol=1e-4)
        s += l

    print("KERNEL_OK")
</pallas_src>

<mosaic_0001>
module attributes {stable_mosaic.version = 11 : i64} {
  func.func @kernel(%arg0: i32, %arg1: i32, %arg2: memref<256x256xbf16, #tpu.memory_space<vmem>>, %arg3: memref<256x128xbf16, #tpu.memory_space<vmem>>, %arg4: memref<1x128xf32, #tpu.memory_space<vmem>>, %arg5: memref<1x128xf32, #tpu.memory_space<vmem>>, %arg6: memref<256x128xbf16, #tpu.memory_space<vmem>>, %arg7: memref<256x128xf32, #tpu.memory_space<vmem>>) attributes {dimension_semantics = [#tpu.dimension_semantics<parallel>, #tpu.dimension_semantics<arbitrary>], iteration_bounds = array<i64: 8, 1>, scalar_prefetch = 0 : i64, scratch_operands = 1 : i64, tpu.core_type = #tpu.core_type<tc>, window_params = [{transform_indices = @transform_0, window_bounds = array<i64: 256, 256>}, {transform_indices = @transform_1, window_bounds = array<i64: 256, 128>}, {pipeline_mode = #tpu.pipeline_mode<synchronous>, transform_indices = @transform_2, window_bounds = array<i64: 1, 128>}, {pipeline_mode = #tpu.pipeline_mode<synchronous>, transform_indices = @transform_3, window_bounds = array<i64: 1, 128>}, {transform_indices = @transform_4, window_bounds = array<i64: 256, 128>}]} {
    %c0_i32 = arith.constant 0 : i32
    %0 = arith.cmpi eq, %arg1, %c0_i32 : i32
    %1 = arith.extui %0 : i1 to i32
    %c0_i32_0 = arith.constant 0 : i32
    %2 = arith.cmpi ne, %1, %c0_i32_0 : i32
    scf.if %2 {
      %cst_10 = arith.constant 0.000000e+00 : f32
      %12 = vector.broadcast %cst_10 : f32 to vector<256x128xf32>
      %c0_11 = arith.constant 0 : index
      %c0_12 = arith.constant 0 : index
      %13 = vector.load %arg7[%c0_11, %c0_12] : memref<256x128xf32, #tpu.memory_space<vmem>>, vector<256x128xf32>
      tpu.vector_store %arg7[%c0_11, %c0_12], %12 {strides = array<i32>} : memref<256x128xf32, #tpu.memory_space<vmem>>, vector<256x128xf32>,
    } else {
    }
    %c0 = arith.constant 0 : index
    %c0_1 = arith.constant 0 : index
    %3 = vector.load %arg7[%c0, %c0_1] : memref<256x128xf32, #tpu.memory_space<vmem>>, vector<256x128xf32>
    %c0_2 = arith.constant 0 : index
    %c0_3 = arith.constant 0 : index
    %4 = vector.load %arg2[%c0_2, %c0_3] : memref<256x256xbf16, #tpu.memory_space<vmem>>, vector<256x256xbf16>
    %c0_4 = arith.constant 0 : index
    %c0_5 = arith.constant 0 : index
    %5 = vector.load %arg3[%c0_4, %c0_5] : memref<256x128xbf16, #tpu.memory_space<vmem>>, vector<256x128xbf16>
    %cst = arith.constant dense<0.000000e+00> : vector<256x128xf32>
    %6 = tpu.matmul %4, %5, %cst {dimension_numbers = #tpu.dot_dimension_numbers<[1], [0], [0], [1], [0, 0, 1, 1], [], []>} : vector<256x256xbf16>, vector<256x128xbf16>, vector<256x128xf32> -> vector<256x128xf32>
    %7 = arith.addf %3, %6 : vector<256x128xf32>
    %c0_6 = arith.constant 0 : index
    %c0_7 = arith.constant 0 : index
    %8 = vector.load %arg7[%c0_6, %c0_7] : memref<256x128xf32, #tpu.memory_space<vmem>>, vector<256x128xf32>
    tpu.vector_store %arg7[%c0_6, %c0_7], %7 {strides = array<i32>} : memref<256x128xf32, #tpu.memory_space<vmem>>, vector<256x128xf32>,
    %c0_i32_8 = arith.constant 0 : i32
    %9 = arith.cmpi eq, %arg1, %c0_i32_8 : i32
    %10 = arith.extui %9 : i1 to i32
    %c0_i32_9 = arith.constant 0 : i32
    %11 = arith.cmpi ne, %10, %c0_i32_9 : i32
    scf.if %11 {
      %c0_10 = arith.constant 0 : index
      %c0_11 = arith.constant 0 : index
      %12 = vector.load %arg7[%c0_10, %c0_11] : memref<256x128xf32, #tpu.memory_space<vmem>>, vector<256x128xf32>
      %c0_12 = arith.constant 0 : index
      %c0_13 = arith.constant 0 : index
      %13 = vector.load %arg4[%c0_12, %c0_13] : memref<1x128xf32, #tpu.memory_space<vmem>>, vector<1x128xf32>
      %14 = vector.broadcast %13 : vector<1x128xf32> to vector<256x128xf32>
      %15 = arith.mulf %12, %14 : vector<256x128xf32>
      %c0_14 = arith.constant 0 : index
      %c0_15 = arith.constant 0 : index
      %16 = vector.load %arg5[%c0_14, %c0_15] : memref<1x128xf32, #tpu.memory_space<vmem>>, vector<1x128xf32>
      %17 = vector.broadcast %16 : vector<1x128xf32> to vector<256x128xf32>
      %18 = arith.addf %15, %17 : vector<256x128xf32>
      %cst_16 = arith.constant 0.000000e+00 : f32
      %19 = vector.broadcast %cst_16 : f32 to vector<256x128xf32>
      %20 = arith.maximumf %18, %19 : vector<256x128xf32>
      %21 = arith.truncf %20 : vector<256x128xf32> to vector<256x128xbf16>
      %c0_17 = arith.constant 0 : index
      %c0_18 = arith.constant 0 : index
      %22 = vector.load %arg6[%c0_17, %c0_18] : memref<256x128xbf16, #tpu.memory_space<vmem>>, vector<256x128xbf16>
      tpu.vector_store %arg6[%c0_17, %c0_18], %21 {strides = array<i32>} : memref<256x128xbf16, #tpu.memory_space<vmem>>, vector<256x128xbf16>,
    } else {
    }
    return
  }
  func.func @transform_0(%arg0: i32, %arg1: i32) -> (i32, i32) {
    %c0_i32 = arith.constant 0 : i32
    return %arg0, %arg1 : i32, i32
  }
  func.func @transform_1(%arg0: i32, %arg1: i32) -> (i32, i32) {
    %c0_i32 = arith.constant 0 : i32
    %c0_i32_0 = arith.constant 0 : i32
    return %arg1, %c0_i32 : i32, i32
  }
  func.func @transform_2(%arg0: i32, %arg1: i32) -> (i32, i32) {
    %c0_i32 = arith.constant 0 : i32
    %c0_i32_0 = arith.constant 0 : i32
    %c0_i32_1 = arith.constant 0 : i32
    return %c0_i32, %c0_i32_0 : i32, i32
  }
  func.func @transform_3(%arg0: i32, %arg1: i32) -> (i32, i32) {
    %c0_i32 = arith.constant 0 : i32
    %c0_i32_0 = arith.constant 0 : i32
    %c0_i32_1 = arith.constant 0 : i32
    return %c0_i32, %c0_i32_0 : i32, i32
  }
  func.func @transform_4(%arg0: i32, %arg1: i32) -> (i32, i32) {
    %c0_i32 = arith.constant 0 : i32
    %c0_i32_0 = arith.constant 0 : i32
    return %arg0, %c0_i32 : i32, i32
  }
}

</mosaic_0001>

<bundles_post_ra>
// kernel: tpu_custom_call.1
= control target key start
LH: loop header
LB: loop body
LE: loop exit
PB: predicated region body
PF: predicated region fallthrough
CT: control target
= control target key end

     0   :  { %9 = vsyncpa [#allocation4], 0  ;;  %s2315_s0 = inlined_call_operand.hbm [shape: bf16[2048,256], index: 0, kind: input, shape index: {}]   ;;  %s2316_s1 = inlined_call_operand.hbm [shape: bf16[256,128], index: 1, kind: input, shape index: {}]   ;;  %s2317_s2 = inlined_call_operand.vmem [shape: f32[1,128], index: 2, kind: input, shape index: {}]   ;;  %s2318_s3 = inlined_call_operand.vmem [shape: f32[1,128], index: 3, kind: input, shape index: {}]   ;;  %s2319_s4 = inlined_call_operand.hbm [shape: bf16[2048,128], index: 4, kind: output, shape index: {}]  }
   0x1   :  { %11 = vsyncpa [#allocation4 + $0x1], 0 }
   0x2   :  { %12 = vsyncpa [#allocation7], 0 }
   0x3   :  { %13 = vsyncpa [#allocation5], 0 }
   0x4   :  { %15 = vsyncpa [#allocation5 + $0x1], 0  ;;  %s1970_s15 = smov 0   ;;  %s1972_s16 = smov 0  }
   0x5   :  { %s1974_s17 = smov 0   ;;  %s1976_s18 = smov 0  }
   0x6   :  { %s1978_s19 = smov 0   ;;  %s1980_s20 = smov 0  }
   0x7 LB: > { %s1289_s21 = sadd.s32 4294967295, %s1934_s20   ;;  %s1290_s22 = sadd.s32 4294967294, %s1934_s20   ;;  %s1934_s20 = sphi %s1980_s20, %s21_s20   ;;  %s1930_s19 = sphi %s1978_s19, %s2342_s19   ;;  %s1926_s18 = sphi %s1976_s18, %s2341_s18   ;;  %s1922_s17 = sphi %s1974_s17, %s2340_s17   ;;  %s1918_s16 = sphi %s1972_s16, %s2339_s16   ;;  %s1914_s15 = sphi %s1970_s15, %s2338_s15  }
   0x8   : > { %p55_p0 = scmp.ne.s32.totalorder %s1918_s16, %s1914_s15  ;;  %p2004_p1 = scmp.eq.s32.totalorder %s1289_s21, 0 }
   0x9   : > { %p2008_p2 = scmp.eq.s32.totalorder %s1289_s21, 7  ;;  %p153_p3 = scmp.eq.s32.totalorder %s1290_s22, 7 }
   0xa   : > { %s2324_s23 = scalar_select %p2004_p1, 1, 0 }
   0xb   : > { %s2325_s24 = scalar_select %p2008_p2, 1, 0 }
   0xc   : > { %p2014_p4 = por %p2004_p1, %p55_p0  ;;  %p1291_p5 = scmp.ge.s32.totalorder %s1934_s20, 1 }
   0xd   : > { %p2019_p6 = por %p153_p3, %p55_p0  ;;  %p160_p7 = scmp.lt.s32.totalorder %s1934_s20, 9 }
   0xe   : > { %s2326_s25 = scalar_select %p2014_p4, 1, 0 }
   0xf   : > { %s2327_s26 = scalar_select %p2019_p6, 1, 0 }
  0x10   : > { %p2024_p8 = pnand %p1291_p5, %p160_p7  ;;  %s1936_s28 = smov [#allocation6]  }
  0x11   : > { %s175_s29 = sshll.u32 %s1936_s28, 4  ;;  %s33_s5 = sadd.s32 1, %s1930_s19  ;;  %s176_s29 = int_to_ptr.vmem [resolvable:$true] %s175_s29 }
  0x12   : > { %s2328_s27 = scalar_select %p2024_p8, 1, 0 }
  0x13   : > { %p1655_p9 = pneg %p2024_p8  ;;  %s1790_s8 = scalar_lea.hbm %s2316_s1, 2048 }
  0x14   : > { %p1791_p11 = scmp.ne.s32.totalorder %s2316_s1, %s1790_s8  ;;  %p1797_p3 = scmp.lt.u32.totalorder %s1790_s8, %s2316_s1 }
  0x15   : > { %p2032_p10 = pnand %p1655_p9, %p2004_p1 }
  0x17   : > { %p1792_p12 = pneg %p2032_p10 }
  0x19   : > { %p1793_p13 = pnand %p1792_p12, %p1791_p11 }
  0x1b   : > { %p1794_p0 = pneg %p1793_p13 }
  0x1d   : > { %p1799_p5 = pnand %p1797_p3, %p1794_p0 }
  0x1f   : > { %1802 = shalt.err (!%p1799_p5)
}
  0x20   : > { %s1803_s13 = scalar_lea.vmem %s176_s29, 2048  ;;  %p1811_p1 = scmp.lt.s32.totalorder %s176_s29, %s176_s29 }
  0x21   : > { %p1804_p7 = scmp.ne.s32.totalorder %s176_s29, %s1803_s13  ;;  %p1812_p4 = scmp.lt.s32.totalorder %s1803_s13, %s1803_s13 }
  0x23   : > { %p1806_p9 = pnand %p1804_p7, %p1792_p12  ;;  %p1813_p8 = por %p1812_p4, %p1811_p1 }
  0x25   : > { %p1807_p6 = pneg %p1806_p9 }
  0x27   : > { %p1814_p2 = pnand %p1813_p8, %p1807_p6 }
  0x29   : > { %1817 = shalt.err (!%p1814_p2)
}
  0x2a   : > { %s1937_s14 = smov 64   ;;  %s1938_s21 = smov 4  }
  0x2b   : > { %1658 = dma.hbm_to_vmem [thread:$0]  (!%p2032_p10), %s2316_s1, 2048, %s176_s29, [#allocation7], %s1937_s14, %s1937_s14, %s1938_s21  }
  0x2c   : > { %p35_p1 = scmp.ge.s32.totalorder %s33_s5, 8  ;;  %s42_s6 = sadd.s32 1, %s1922_s17 }
  0x2d   : > { %p49_p2 = scmp.ne.s32.totalorder %s1922_s17, %s1918_s16  ;;  %p50_p4 = scmp.eq.s32.totalorder %s1934_s20, 0 }
  0x2e   : > { %s2344_s5 = smov (%p35_p1, %s33_s5), 0  ;;  %p2331_p8 = scmp.ne.s32.totalorder %s2325_s24, 0 }
  0x2f   : > { %p2059_p6 = por %p50_p4, %p49_p2  ;;  %s37_s30 = ssub.s32 %s1930_s19, %s2344_s5 }
  0x30   : > { %p2065_p11 = por %p2331_p8, %p49_p2  ;;  %p1668_p12 = scmp.lt.s32.totalorder %s1934_s20, 8 }
  0x31   : > { %p40_p10 = scmp.eq.s32.totalorder %s37_s30, 0  ;;  %s195_s29 = sand.u32 1, %s1922_s17  }
  0x32   : > { %s1294_s9 = sshll.u32 %s195_s29, 8  ;;  %s1390_s11 = sshll.u32 %s1930_s19, 12 }
  0x33   : > { %s2074_s10 = scalar_select %p40_p10, %s1922_s17, %s42_s6  }
  0x34   : > { %s2080_s14 = scalar_lea.hbm %s2315_s0, %s1390_s11  ;;  %s199_s24 = scalar_lea.vmem [#allocation3], %s1294_s9 }
  0x35   : > { %s209_s21 = sshll.u32 %s199_s24, 4  ;;  %p2086_p13 = pnand %p1668_p12, %p2059_p6  ;;  %s2082_s21 = int_to_ptr.vmem [resolvable:$true] %s209_s21 }
  0x36   : > { %s2090_s28 = scalar_lea.sflag [#allocation4], %s195_s29  ;;  %s1818_s6 = scalar_lea.hbm %s2080_s14, 4096 }
  0x37   : > { %p1819_p0 = scmp.ne.s32.totalorder %s2080_s14, %s1818_s6  ;;  %p1820_p3 = pneg %p2086_p13 }
  0x38   : > { %s1823_s7 = scalar_lea.hbm %s2315_s0, 32768  ;;  %p1824_p9 = scmp.lt.u32.totalorder %s2080_s14, %s2315_s0 }
  0x39   : > { %p1821_p5 = pnand %p1820_p3, %p1819_p0  ;;  %p1825_p1 = scmp.lt.u32.totalorder %s1823_s7, %s1818_s6 }
  0x3a   : > { %p1827_p4 = scmp.lt.u32.totalorder %s1818_s6, %s2080_s14 }
  0x3b   : > { %p1822_p7 = pneg %p1821_p5  ;;  %p1826_p2 = por %p1825_p1, %p1824_p9 }
  0x3d   : > { %p1828_p6 = por %p1827_p4, %p1826_p2 }
  0x3f   : > { %p1829_p8 = pnand %p1828_p6, %p1822_p7 }
  0x41   : > { %1832 = shalt.err (!%p1829_p8)
}
  0x42   : > { %s1833_s29 = scalar_lea.vmem %s2082_s21, 4096  ;;  %s1939_s13 = smov [#allocation3]  }
  0x43   : > { %p1834_p12 = scmp.ne.s32.totalorder %s2082_s21, %s1833_s29  ;;  %s1838_s24 = sshll.u32 %s1939_s13, 4  ;;  %s1839_s24 = int_to_ptr.vmem [resolvable:$false] %s1838_s24 }
  0x44   : > { %s1840_s30 = scalar_lea.vmem %s1839_s24, 8192  ;;  %p1841_p5 = scmp.lt.s32.totalorder %s2082_s21, %s1839_s24 }
  0x45   : > { %p1836_p10 = pnand %p1834_p12, %p1820_p3  ;;  %p1842_p9 = scmp.lt.s32.totalorder %s1840_s30, %s1833_s29 }
  0x47   : > { %p1837_p0 = pneg %p1836_p10  ;;  %p1843_p1 = por %p1842_p9, %p1841_p5 }
  0x49   : > { %p1844_p2 = pnand %p1843_p1, %p1837_p0 }
  0x4b   : > { %1847 = shalt.err (!%p1844_p2)
}
  0x4c   : > { %s1940_s6 = smov 128   ;;  %s1941_s9 = smov 8  }
  0x4d   : > { %1662 = dma.hbm_to_vmem [thread:$0]  (!%p2086_p13), %s2080_s14, 4096, %s2082_s21, %s2090_s28, %s1940_s6, %s1940_s6, %s1941_s9  }
  0x4e   : > { %p2334_p3 = scmp.ne.s32.totalorder %s2328_s27, 0 }
  0x4f   : > { %s2121_s7 = sand.u32 (!%p2334_p3), 1, %s1918_s16   ;;  %p2335_p7 = scmp.ne.s32.totalorder (!%p2334_p3), %s2326_s25, 0 }
  0x50   : > { %221 = sbr.rel (%p2334_p3) target bundleno = 421 (0x1a5), region = 36  ;;  %s1299_s11 = sshll.u32 (!%p2334_p3), %s2121_s7, 8 }
  0x51   : > { %s224_s12 = scalar_lea.sflag (!%p2334_p3), [#allocation4], %s2121_s7  ;;  %s2125_s29 = scalar_lea.vmem (!%p2334_p3), [#allocation3], %s1299_s11 }
  0x57   : > { %1901 = dma.done.wait (%p2335_p7), %s224_s12, 4096  }
  0x58   : > { %1903 = vsyncadd (%p2335_p7), %s224_s12, 4294963200  ;;  %p2336_p13 = scmp.ne.s32.totalorder %s2324_s23, 0 }
  0x5a   : > { %1905 = dma.done.wait (%p2336_p13), [#allocation7], 2048  }
  0x5b   : > { %1907 = vsyncadd (%p2336_p13), [#allocation7], 4294965248  ;;  %v1726_v0 = vld [vmem:[#allocation6 + $0x40] sm:$0xff]   ;;  %v1728_v2 = vld [vmem:[#allocation6 + $0x48] sm:$0xff]   ;;  %s1301_s21 = sshll.u32 %s2121_s7, 7  ;;  %s1423_s28 = sshll.u32 %s1926_s18, 11 }
  0x5c   : > { %v1727_v1 = vld [vmem:[#allocation6] sm:$0xff]   ;;  %1519 = vmatprep.subr.bf16.mxu0 %v1726_v0  ;;  %1631 = vmatprep.subr.bf16.mxu1 %v1726_v0  ;;  %v1729_v3 = vld [vmem:[#allocation6 + $0x8] sm:$0xff]   ;;  %v1730_v4 = vld [vmem:[#allocation6 + $0x50] sm:$0xff]   ;;  %s2188_s22 = scalar_lea.vmem [#allocation8], %s1301_s21  ;;  %s2263_s6 = scalar_lea.hbm %s2319_s4, %s1423_s28 }
  0x5d   : > { %1520 = vmatpush3.bf16.msra.mxu0 %v1727_v1  ;;  %1639 = vmatpush3.bf16.msra.mxu1 %v1727_v1  ;;  %v1731_v5 = vld [vmem:[#allocation6 + $0x10] sm:$0xff]   ;;  %v1732_v6 = vld [vmem:[#allocation6 + $0x58] sm:$0xff]   ;;  %v1734_v8 = vld [vmem:[#allocation6 + $0x60] sm:$0xff]   ;;  %s1193_s13 = sshll.u32 %s2188_s22, 4  ;;  %s1180_s18 = scalar_lea.sflag [#allocation5], %s2121_s7  ;;  %s2265_s13 = int_to_ptr.vmem [resolvable:$true] %s1193_s13 }
  0x5e   : > { %1521 = vmatprep.subr.bf16.mxu0 %v1728_v2  ;;  %1632 = vmatprep.subr.bf16.mxu1 %v1728_v2  ;;  %v1733_v7 = vld [vmem:[#allocation6 + $0x18] sm:$0xff]   ;;  %v1735_v9 = vld [vmem:[#allocation6 + $0x20] sm:$0xff]   ;;  %v1736_v10 = vld [vmem:[#allocation6 + $0x68] sm:$0xff]   ;;  %s1848_s9 = scalar_lea.vmem %s2265_s13, 2048  ;;  %s1942_s11 = smov [#allocation8]  }
  0x5f   : > { %v1744_v11 = vld [vmem:[%s2125_s29 + $0x4] ss:$8 sps:$4 sm:$0xff]   ;;  %v1738_v14 = vld [vmem:[#allocation6 + $0x70] sm:$0xff]   ;;  %v1740_v16 = vld [vmem:[#allocation6 + $0x78] sm:$0xff]   ;;  %p1849_p4 = scmp.ne.s32.totalorder %s2265_s13, %s1848_s9  ;;  %s1852_s12 = sshll.u32 %s1942_s11, 4  ;;  %s1853_s12 = int_to_ptr.vmem [resolvable:$false] %s1852_s12 }
  0x60   : > { %v1747_v12 = vld [vmem:[%s2125_s29 + $0x84] ss:$8 sps:$4 sm:$0xff]   ;;  %681 = vmatprep.mubr.bf16.mxu0 %v1744_v11  ;;  %v1739_v15 = vld [vmem:[#allocation6 + $0x30] sm:$0xff]   ;;  %v1741_v17 = vld [vmem:[#allocation6 + $0x38] sm:$0xff]   ;;  %p1855_p12 = scmp.lt.s32.totalorder %s2265_s13, %s1853_s12 }
  0x61   : > { %1522 = vmatpush3.bf16.msra.mxu0 %v1729_v3  ;;  %1640 = vmatpush3.bf16.msra.mxu1 %v1729_v3  ;;  %v1737_v13 = vld [vmem:[#allocation6 + $0x28] sm:$0xff]   ;;  %v1748_v20 = vld [vmem:[%s2125_s29 + $0x14] ss:$8 sps:$4 sm:$0xff]   ;;  %v1752_v22 = vld [vmem:[%s2125_s29 + $0x10] ss:$8 sps:$4 sm:$0xff]   ;;  %p1850_p6 = pnand %p1849_p4, %p2065_p11 }
  0x62   : > { %1523 = vmatprep.subr.bf16.mxu0 %v1730_v4  ;;  %1633 = vmatprep.subr.bf16.mxu1 %v1730_v4  ;;  %v1742_v18 = vld [vmem:[%s2125_s29] ss:$8 sps:$4 sm:$0xff]   ;;  %v1750_v21 = vld [vmem:[%s2125_s29 + $0x94] ss:$8 sps:$4 sm:$0xff]   ;;  %v1753_v23 = vld [vmem:[%s2125_s29 + $0x90] ss:$8 sps:$4 sm:$0xff]  }
  0x63   : > { %745 = vmatprep.mubr.bf16.mxu1 %v1747_v12  ;;  %v1745_v19 = vld [vmem:[%s2125_s29 + $0x80] ss:$8 sps:$4 sm:$0xff]   ;;  %v1754_v24 = vld [vmem:[%s2125_s29 + $0x24] ss:$8 sps:$4 sm:$0xff]   ;;  %v1760_v28 = vld [vmem:[%s2125_s29 + $0x34] ss:$8 sps:$4 sm:$0xff]   ;;  %p1851_p8 = pneg %p1850_p6 }
  0x64   : > { %v1756_v25 = vld [vmem:[%s2125_s29 + $0xa4] ss:$8 sps:$4 sm:$0xff]   ;;  %v1758_v26 = vld [vmem:[%s2125_s29 + $0x20] ss:$8 sps:$4 sm:$0xff]   ;;  %v1762_v29 = vld [vmem:[%s2125_s29 + $0xb4] ss:$8 sps:$4 sm:$0xff]  }
  0x65   : > { %1524 = vmatpush3.bf16.msra.mxu0 %v1731_v5  ;;  %1641 = vmatpush3.bf16.msra.mxu1 %v1731_v5  ;;  %v1759_v27 = vld [vmem:[%s2125_s29 + $0xa0] ss:$8 sps:$4 sm:$0xff]   ;;  %v1764_v30 = vld [vmem:[%s2125_s29 + $0x30] ss:$8 sps:$4 sm:$0xff]   ;;  %v1766_v32 = vld [vmem:[%s2125_s29 + $0x44] ss:$8 sps:$4 sm:$0xff]  }
  0x66   : > { %1525 = vmatprep.subr.bf16.mxu0 %v1732_v6  ;;  %1634 = vmatprep.subr.bf16.mxu1 %v1732_v6  ;;  %v1765_v31 = vld [vmem:[%s2125_s29 + $0xb0] ss:$8 sps:$4 sm:$0xff]   ;;  %v1768_v33 = vld [vmem:[%s2125_s29 + $0xc4] ss:$8 sps:$4 sm:$0xff]   ;;  %v1770_v34 = vld [vmem:[%s2125_s29 + $0x40] ss:$8 sps:$4 sm:$0xff]  }
  0x67   : > { %v1771_v35 = vld [vmem:[%s2125_s29 + $0xc0] ss:$8 sps:$4 sm:$0xff]   ;;  %v1772_v36 = vld [vmem:[%s2125_s29 + $0x54] ss:$8 sps:$4 sm:$0xff]   ;;  %v1776_v38 = vld [vmem:[%s2125_s29 + $0x50] ss:$8 sps:$4 sm:$0xff]  }
  0x68   : > { %v1774_v37 = vld [vmem:[%s2125_s29 + $0xd4] ss:$8 sps:$4 sm:$0xff]   ;;  %v1777_v39 = vld [vmem:[%s2125_s29 + $0xd0] ss:$8 sps:$4 sm:$0xff]   ;;  %v1778_v40 = vld [vmem:[%s2125_s29 + $0x64] ss:$8 sps:$4 sm:$0xff]  }
  0x69   : > { %1526 = vmatpush3.bf16.msra.mxu0 %v1733_v7  ;;  %1642 = vmatpush3.bf16.msra.mxu1 %v1733_v7  ;;  %v1780_v41 = vld [vmem:[%s2125_s29 + $0xe4] ss:$8 sps:$4 sm:$0xff]   ;;  %v1782_v42 = vld [vmem:[%s2125_s29 + $0x60] ss:$8 sps:$4 sm:$0xff]   ;;  %v1784_v44 = vld [vmem:[%s2125_s29 + $0x74] ss:$8 sps:$4 sm:$0xff]  }
  0x6a   : > { %1527 = vmatprep.subr.bf16.mxu0 %v1734_v8  ;;  %1635 = vmatprep.subr.bf16.mxu1 %v1734_v8  ;;  %v1783_v43 = vld [vmem:[%s2125_s29 + $0xe0] ss:$8 sps:$4 sm:$0xff]   ;;  %v1786_v45 = vld [vmem:[%s2125_s29 + $0xf4] ss:$8 sps:$4 sm:$0xff]   ;;  %v1788_v46 = vld [vmem:[%s2125_s29 + $0x70] ss:$8 sps:$4 sm:$0xff]  }
  0x6b   : > { %v1789_v47 = vld [vmem:[%s2125_s29 + $0xf0] ss:$8 sps:$4 sm:$0xff]   ;;  %v2170_v51 = vld [vmem:[%s2317_s2] ss:$0 sm:$0xff]  ;;  %s1854_s29 = scalar_lea.vmem %s1853_s12, 4096 }
  0x6c   : > { %v2175_v57 = vld [vmem:[%s2318_s3] ss:$0 sm:$0xff]  ;;  %p1856_p10 = scmp.lt.s32.totalorder %s1854_s29, %s1848_s9 }
  0x6d   : > { %1528 = vmatpush3.bf16.msra.mxu0 %v1735_v9  ;;  %1643 = vmatpush3.bf16.msra.mxu1 %v1735_v9 }
  0x6e   : > { %1529 = vmatprep.subr.bf16.mxu0 %v1736_v10  ;;  %1636 = vmatprep.subr.bf16.mxu1 %v1736_v10  ;;  %p1857_p0 = por %p1856_p10, %p1855_p12 }
  0x70   : > { %p1858_p5 = pnand %p1857_p0, %p1851_p8 }
  0x71   : > { %1530 = vmatpush3.bf16.msra.mxu0 %v1737_v13  ;;  %1644 = vmatpush3.bf16.msra.mxu1 %v1737_v13 }
  0x72   : > { %1531 = vmatprep.subr.bf16.mxu0 %v1738_v14  ;;  %1637 = vmatprep.subr.bf16.mxu1 %v1738_v14 }
  0x75   : > { %1532 = vmatpush3.bf16.msra.mxu0 %v1739_v15  ;;  %1645 = vmatpush3.bf16.msra.mxu1 %v1739_v15 }
  0x76   : > { %1533 = vmatprep.subr.bf16.mxu0 %v1740_v16  ;;  %1638 = vmatprep.subr.bf16.mxu1 %v1740_v16 }
  0x79   : > { %1534 = vmatpush3.bf16.msra.mxu0 %v1741_v17  ;;  %1646 = vmatpush3.bf16.msra.mxu1 %v1741_v17 }
  0x7c   : > { %682 = vmatmul.mubr.bf16.vlgmr.msra.gmra.mrb[0].mxu0 %v1742_v18  ;;  %746 = vmatmul.mubr.bf16.vlgmr.msra.gmra.mrb[0].mxu1 %v1745_v19 }
  0x7d   : > { %689 = vmatprep.mubr.bf16.mxu0 %v1748_v20  ;;  %753 = vmatprep.mubr.bf16.mxu1 %v1750_v21 }
  0x84   : > { %690 = vmatmul.mubr.bf16.gmra.mrb[4].mxu0 %v1752_v22  ;;  %754 = vmatmul.mubr.bf16.gmra.mrb[4].mxu1 %v1753_v23 }
  0x85   : > { %697 = vmatprep.mubr.bf16.mxu0 %v1754_v24  ;;  %761 = vmatprep.mubr.bf16.mxu1 %v1756_v25 }
  0x8c   : > { %698 = vmatmul.mubr.bf16.gmra.mrb[8].mxu0 %v1758_v26  ;;  %762 = vmatmul.mubr.bf16.gmra.mrb[8].mxu1 %v1759_v27 }
  0x8d   : > { %705 = vmatprep.mubr.bf16.mxu0 %v1760_v28  ;;  %769 = vmatprep.mubr.bf16.mxu1 %v1762_v29 }
  0x94   : > { %706 = vmatmul.mubr.bf16.gmra.mrb[12].mxu0 %v1764_v30  ;;  %770 = vmatmul.mubr.bf16.gmra.mrb[12].mxu1 %v1765_v31 }
  0x95   : > { %713 = vmatprep.mubr.bf16.mxu0 %v1766_v32  ;;  %777 = vmatprep.mubr.bf16.mxu1 %v1768_v33 }
  0x9c   : > { %714 = vmatmul.mubr.bf16.gmra.mrb[16].mxu0 %v1770_v34  ;;  %778 = vmatmul.mubr.bf16.gmra.mrb[16].mxu1 %v1771_v35 }
  0x9d   : > { %721 = vmatprep.mubr.bf16.mxu0 %v1772_v36  ;;  %785 = vmatprep.mubr.bf16.mxu1 %v1774_v37 }
  0xa4   : > { %722 = vmatmul.mubr.bf16.gmra.mrb[20].mxu0 %v1776_v38  ;;  %786 = vmatmul.mubr.bf16.gmra.mrb[20].mxu1 %v1777_v39 }
  0xa5   : > { %729 = vmatprep.mubr.bf16.mxu0 %v1778_v40  ;;  %793 = vmatprep.mubr.bf16.mxu1 %v1780_v41 }
  0xac   : > { %730 = vmatmul.mubr.bf16.gmra.mrb[24].mxu0 %v1782_v42  ;;  %794 = vmatmul.mubr.bf16.gmra.mrb[24].mxu1 %v1783_v43 }
  0xad   : > { %737 = vmatprep.mubr.bf16.mxu0 %v1784_v44  ;;  %801 = vmatprep.mubr.bf16.mxu1 %v1786_v45 }
  0xb4   : > { %738 = vmatmul.mubr.bf16.gmra.mrb[28].mxu0 %v1788_v46  ;;  %802 = vmatmul.mubr.bf16.gmra.mrb[28].mxu1 %v1789_v47 }
 0x14f   : > { %v1535_v48 = vpop.f32.mrb[0].mxu0  ;;  %v1583_v49 = vpop.f32.mrb[0].mxu1 }
 0x150   : > { %v1536_v50 = vpop.f32.mrb[1].mxu0  ;;  %v1584_v52 = vpop.f32.mrb[1].mxu1 }
 0x151   : > { %v1537_v53 = vadd.f32 %v1536_v50, %v1535_v48  ;;  %v1585_v54 = vadd.f32 %v1584_v52, %v1583_v49  ;;  %v1538_v55 = vpop.f32.mrb[2].mxu0  ;;  %v1586_v56 = vpop.f32.mrb[2].mxu1 }
 0x152   : > { %v1539_v58 = vpop.f32.mrb[3].mxu0  ;;  %v1587_v59 = vpop.f32.mrb[3].mxu1 }
 0x153   : > { %v916_v60 = vmul.f32 %v1537_v53, %v2170_v51  ;;  %v932_v61 = vmul.f32 %v1585_v54, %v2170_v51  ;;  %v1540_v62 = vadd.f32 %v1539_v58, %v1538_v55  ;;  %v1588_v63 = vadd.f32 %v1587_v59, %v1586_v56 }
 0x155   : > { %v955_v0 = vadd.f32 %v2175_v57, %v916_v60  ;;  %v971_v1 = vadd.f32 %v2175_v57, %v932_v61  ;;  %v917_v2 = vmul.f32 %v1540_v62, %v2170_v51  ;;  %v933_v3 = vmul.f32 %v1588_v63, %v2170_v51 }
 0x157   : > { %v956_v4 = vadd.f32 %v2175_v57, %v917_v2  ;;  %v972_v5 = vadd.f32 %v2175_v57, %v933_v3  ;;  %v1541_v6 = vpop.f32.mrb[4].mxu0  ;;  %v1589_v7 = vpop.f32.mrb[4].mxu1  ;;  %v987_v8 = vmax.f32 %v955_v0, 0.0  ;;  %v1003_v9 = vmax.f32 %v971_v1, 0.0 }
 0x158   : > { %v1542_v10 = vpop.f32.mrb[5].mxu0  ;;  %v1590_v11 = vpop.f32.mrb[5].mxu1 }
 0x159   : > { %v988_v12 = vmax.f32 %v956_v4, 0.0  ;;  %v1004_v13 = vmax.f32 %v972_v5, 0.0  ;;  %v1543_v14 = vadd.f32 %v1542_v10, %v1541_v6  ;;  %v1591_v15 = vadd.f32 %v1590_v11, %v1589_v7  ;;  %v1544_v16 = vpop.f32.mrb[6].mxu0  ;;  %v1592_v17 = vpop.f32.mrb[6].mxu1 }
 0x15a   : > { %v1545_v18 = vpop.f32.mrb[7].mxu0  ;;  %v1593_v19 = vpop.f32.mrb[7].mxu1 }
 0x15b   : > { %v1427_v20 = vpack.c.bf16 %v988_v12, %v987_v8  ;;  %v1467_v21 = vpack.c.bf16 %v1004_v13, %v1003_v9  ;;  %v918_v22 = vmul.f32 %v1543_v14, %v2170_v51  ;;  %v934_v23 = vmul.f32 %v1591_v15, %v2170_v51 }
 0x15c   : > { %v1546_v24 = vadd.f32 %v1545_v18, %v1544_v16  ;;  %v1594_v25 = vadd.f32 %v1593_v19, %v1592_v17 }
 0x15d   : > { %1428 = vst [vmem:[%s2188_s22] sm:$0xff] %v1427_v20   ;;  %1511 = vst [vmem:[%s2188_s22 + $0x40] sm:$0xff] %v1467_v21   ;;  %v957_v26 = vadd.f32 %v2175_v57, %v918_v22  ;;  %v973_v27 = vadd.f32 %v2175_v57, %v934_v23 }
 0x15e   : > { %v919_v28 = vmul.f32 %v1546_v24, %v2170_v51  ;;  %v935_v29 = vmul.f32 %v1594_v25, %v2170_v51 }
 0x15f   : > { %v1547_v30 = vpop.f32.mrb[8].mxu0  ;;  %v1595_v31 = vpop.f32.mrb[8].mxu1  ;;  %v989_v40 = vmax.f32 %v957_v26, 0.0  ;;  %v1005_v41 = vmax.f32 %v973_v27, 0.0 }
 0x160   : > { %v958_v32 = vadd.f32 %v2175_v57, %v919_v28  ;;  %v974_v33 = vadd.f32 %v2175_v57, %v935_v29  ;;  %v1548_v34 = vpop.f32.mrb[9].mxu0  ;;  %v1596_v35 = vpop.f32.mrb[9].mxu1 }
 0x161   : > { %v1549_v36 = vadd.f32 %v1548_v34, %v1547_v30  ;;  %v1597_v37 = vadd.f32 %v1596_v35, %v1595_v31  ;;  %v1550_v38 = vpop.f32.mrb[10].mxu0  ;;  %v1598_v39 = vpop.f32.mrb[10].mxu1 }
 0x162   : > { %v990_v42 = vmax.f32 %v958_v32, 0.0  ;;  %v1006_v43 = vmax.f32 %v974_v33, 0.0  ;;  %v1551_v44 = vpop.f32.mrb[11].mxu0  ;;  %v1599_v45 = vpop.f32.mrb[11].mxu1 }
 0x163   : > { %v920_v46 = vmul.f32 %v1549_v36, %v2170_v51  ;;  %v936_v47 = vmul.f32 %v1597_v37, %v2170_v51  ;;  %v1552_v48 = vadd.f32 %v1551_v44, %v1550_v38  ;;  %v1600_v49 = vadd.f32 %v1599_v45, %v1598_v39 }
 0x164   : > { %v1432_v50 = vpack.c.bf16 %v990_v42, %v989_v40  ;;  %v1472_v52 = vpack.c.bf16 %v1006_v43, %v1005_v41 }
 0x165   : > { %v959_v53 = vadd.f32 %v2175_v57, %v920_v46  ;;  %v975_v54 = vadd.f32 %v2175_v57, %v936_v47  ;;  %v921_v55 = vmul.f32 %v1552_v48, %v2170_v51  ;;  %v937_v56 = vmul.f32 %v1600_v49, %v2170_v51 }
 0x166   : > { %1504 = vst [vmem:[%s2188_s22 + $0x8] sm:$0xff] %v1432_v50   ;;  %1512 = vst [vmem:[%s2188_s22 + $0x48] sm:$0xff] %v1472_v52  }
 0x167   : > { %v960_v58 = vadd.f32 %v2175_v57, %v921_v55  ;;  %v976_v59 = vadd.f32 %v2175_v57, %v937_v56  ;;  %v1553_v60 = vpop.f32.mrb[12].mxu0  ;;  %v1601_v61 = vpop.f32.mrb[12].mxu1  ;;  %v991_v62 = vmax.f32 %v959_v53, 0.0  ;;  %v1007_v63 = vmax.f32 %v975_v54, 0.0 }
 0x168   : > { %v1554_v0 = vpop.f32.mrb[13].mxu0  ;;  %v1602_v1 = vpop.f32.mrb[13].mxu1 }
 0x169   : > { %v992_v2 = vmax.f32 %v960_v58, 0.0  ;;  %v1008_v3 = vmax.f32 %v976_v59, 0.0  ;;  %v1555_v4 = vadd.f32 %v1554_v0, %v1553_v60  ;;  %v1603_v5 = vadd.f32 %v1602_v1, %v1601_v61  ;;  %v1556_v6 = vpop.f32.mrb[14].mxu0  ;;  %v1604_v7 = vpop.f32.mrb[14].mxu1 }
 0x16a   : > { %v1557_v8 = vpop.f32.mrb[15].mxu0  ;;  %v1605_v9 = vpop.f32.mrb[15].mxu1 }
 0x16b   : > { %v1437_v10 = vpack.c.bf16 %v992_v2, %v991_v62  ;;  %v1477_v11 = vpack.c.bf16 %v1008_v3, %v1007_v63  ;;  %v922_v12 = vmul.f32 %v1555_v4, %v2170_v51  ;;  %v938_v13 = vmul.f32 %v1603_v5, %v2170_v51 }
 0x16c   : > { %v1558_v14 = vadd.f32 %v1557_v8, %v1556_v6  ;;  %v1606_v15 = vadd.f32 %v1605_v9, %v1604_v7 }
 0x16d   : > { %1505 = vst [vmem:[%s2188_s22 + $0x10] sm:$0xff] %v1437_v10   ;;  %1513 = vst [vmem:[%s2188_s22 + $0x50] sm:$0xff] %v1477_v11   ;;  %v961_v16 = vadd.f32 %v2175_v57, %v922_v12  ;;  %v977_v17 = vadd.f32 %v2175_v57, %v938_v13 }
 0x16e   : > { %v923_v18 = vmul.f32 %v1558_v14, %v2170_v51  ;;  %v939_v19 = vmul.f32 %v1606_v15, %v2170_v51 }
 0x16f   : > { %v1559_v20 = vpop.f32.mrb[16].mxu0  ;;  %v1607_v21 = vpop.f32.mrb[16].mxu1  ;;  %v993_v30 = vmax.f32 %v961_v16, 0.0  ;;  %v1009_v31 = vmax.f32 %v977_v17, 0.0 }
 0x170   : > { %v962_v22 = vadd.f32 %v2175_v57, %v923_v18  ;;  %v978_v23 = vadd.f32 %v2175_v57, %v939_v19  ;;  %v1560_v24 = vpop.f32.mrb[17].mxu0  ;;  %v1608_v25 = vpop.f32.mrb[17].mxu1 }
 0x171   : > { %v1561_v26 = vadd.f32 %v1560_v24, %v1559_v20  ;;  %v1609_v27 = vadd.f32 %v1608_v25, %v1607_v21  ;;  %v1562_v28 = vpop.f32.mrb[18].mxu0  ;;  %v1610_v29 = vpop.f32.mrb[18].mxu1 }
 0x172   : > { %v994_v32 = vmax.f32 %v962_v22, 0.0  ;;  %v1010_v33 = vmax.f32 %v978_v23, 0.0  ;;  %v1563_v34 = vpop.f32.mrb[19].mxu0  ;;  %v1611_v35 = vpop.f32.mrb[19].mxu1 }
 0x173   : > { %v924_v36 = vmul.f32 %v1561_v26, %v2170_v51  ;;  %v940_v37 = vmul.f32 %v1609_v27, %v2170_v51  ;;  %v1564_v38 = vadd.f32 %v1563_v34, %v1562_v28  ;;  %v1612_v39 = vadd.f32 %v1611_v35, %v1610_v29 }
 0x174   : > { %v1442_v40 = vpack.c.bf16 %v994_v32, %v993_v30  ;;  %v1482_v41 = vpack.c.bf16 %v1010_v33, %v1009_v31 }
 0x175   : > { %v963_v42 = vadd.f32 %v2175_v57, %v924_v36  ;;  %v979_v43 = vadd.f32 %v2175_v57, %v940_v37  ;;  %v925_v44 = vmul.f32 %v1564_v38, %v2170_v51  ;;  %v941_v45 = vmul.f32 %v1612_v39, %v2170_v51 }
 0x176   : > { %1506 = vst [vmem:[%s2188_s22 + $0x18] sm:$0xff] %v1442_v40   ;;  %1514 = vst [vmem:[%s2188_s22 + $0x58] sm:$0xff] %v1482_v41  }
 0x177   : > { %v964_v46 = vadd.f32 %v2175_v57, %v925_v44  ;;  %v980_v47 = vadd.f32 %v2175_v57, %v941_v45  ;;  %v1565_v48 = vpop.f32.mrb[20].mxu0  ;;  %v1613_v49 = vpop.f32.mrb[20].mxu1  ;;  %v995_v50 = vmax.f32 %v963_v42, 0.0  ;;  %v1011_v52 = vmax.f32 %v979_v43, 0.0 }
 0x178   : > { %v1566_v53 = vpop.f32.mrb[21].mxu0  ;;  %v1614_v54 = vpop.f32.mrb[21].mxu1 }
 0x179   : > { %v996_v55 = vmax.f32 %v964_v46, 0.0  ;;  %v1012_v56 = vmax.f32 %v980_v47, 0.0  ;;  %v1567_v58 = vadd.f32 %v1566_v53, %v1565_v48  ;;  %v1615_v59 = vadd.f32 %v1614_v54, %v1613_v49  ;;  %v1568_v60 = vpop.f32.mrb[22].mxu0  ;;  %v1616_v61 = vpop.f32.mrb[22].mxu1 }
 0x17a   : > { %v1569_v62 = vpop.f32.mrb[23].mxu0  ;;  %v1617_v63 = vpop.f32.mrb[23].mxu1 }
 0x17b   : > { %v1447_v0 = vpack.c.bf16 %v996_v55, %v995_v50  ;;  %v1487_v1 = vpack.c.bf16 %v1012_v56, %v1011_v52  ;;  %v926_v2 = vmul.f32 %v1567_v58, %v2170_v51  ;;  %v942_v3 = vmul.f32 %v1615_v59, %v2170_v51 }
 0x17c   : > { %v1570_v4 = vadd.f32 %v1569_v62, %v1568_v60  ;;  %v1618_v5 = vadd.f32 %v1617_v63, %v1616_v61 }
 0x17d   : > { %1507 = vst [vmem:[%s2188_s22 + $0x20] sm:$0xff] %v1447_v0   ;;  %1515 = vst [vmem:[%s2188_s22 + $0x60] sm:$0xff] %v1487_v1   ;;  %v965_v6 = vadd.f32 %v2175_v57, %v926_v2  ;;  %v981_v7 = vadd.f32 %v2175_v57, %v942_v3 }
 0x17e   : > { %v927_v8 = vmul.f32 %v1570_v4, %v2170_v51  ;;  %v943_v9 = vmul.f32 %v1618_v5, %v2170_v51 }
 0x17f   : > { %v1571_v10 = vpop.f32.mrb[24].mxu0  ;;  %v1619_v11 = vpop.f32.mrb[24].mxu1  ;;  %v997_v20 = vmax.f32 %v965_v6, 0.0  ;;  %v1013_v21 = vmax.f32 %v981_v7, 0.0 }
 0x180   : > { %v966_v12 = vadd.f32 %v2175_v57, %v927_v8  ;;  %v982_v13 = vadd.f32 %v2175_v57, %v943_v9  ;;  %v1572_v14 = vpop.f32.mrb[25].mxu0  ;;  %v1620_v15 = vpop.f32.mrb[25].mxu1 }
 0x181   : > { %v1573_v16 = vadd.f32 %v1572_v14, %v1571_v10  ;;  %v1621_v17 = vadd.f32 %v1620_v15, %v1619_v11  ;;  %v1574_v18 = vpop.f32.mrb[26].mxu0  ;;  %v1622_v19 = vpop.f32.mrb[26].mxu1 }
 0x182   : > { %v998_v22 = vmax.f32 %v966_v12, 0.0  ;;  %v1014_v23 = vmax.f32 %v982_v13, 0.0  ;;  %v1575_v24 = vpop.f32.mrb[27].mxu0  ;;  %v1623_v25 = vpop.f32.mrb[27].mxu1 }
 0x183   : > { %v928_v26 = vmul.f32 %v1573_v16, %v2170_v51  ;;  %v944_v27 = vmul.f32 %v1621_v17, %v2170_v51  ;;  %v1576_v28 = vadd.f32 %v1575_v24, %v1574_v18  ;;  %v1624_v29 = vadd.f32 %v1623_v25, %v1622_v19 }
 0x184   : > { %v1452_v30 = vpack.c.bf16 %v998_v22, %v997_v20  ;;  %v1492_v31 = vpack.c.bf16 %v1014_v23, %v1013_v21 }
 0x185   : > { %v967_v32 = vadd.f32 %v2175_v57, %v928_v26  ;;  %v983_v33 = vadd.f32 %v2175_v57, %v944_v27  ;;  %v929_v34 = vmul.f32 %v1576_v28, %v2170_v51  ;;  %v945_v35 = vmul.f32 %v1624_v29, %v2170_v51 }
 0x186   : > { %1508 = vst [vmem:[%s2188_s22 + $0x28] sm:$0xff] %v1452_v30   ;;  %1516 = vst [vmem:[%s2188_s22 + $0x68] sm:$0xff] %v1492_v31  }
 0x187   : > { %v968_v36 = vadd.f32 %v2175_v57, %v929_v34  ;;  %v984_v37 = vadd.f32 %v2175_v57, %v945_v35  ;;  %v1577_v38 = vpop.f32.mrb[28].mxu0  ;;  %v1625_v39 = vpop.f32.mrb[28].mxu1  ;;  %v999_v40 = vmax.f32 %v967_v32, 0.0  ;;  %v1015_v41 = vmax.f32 %v983_v33, 0.0 }
 0x188   : > { %v1578_v42 = vpop.f32.mrb[29].mxu0  ;;  %v1626_v43 = vpop.f32.mrb[29].mxu1 }
 0x189   : > { %v1000_v44 = vmax.f32 %v968_v36, 0.0  ;;  %v1016_v45 = vmax.f32 %v984_v37, 0.0  ;;  %v1579_v46 = vadd.f32 %v1578_v42, %v1577_v38  ;;  %v1627_v47 = vadd.f32 %v1626_v43, %v1625_v39  ;;  %v1580_v48 = vpop.f32.mrb[30].mxu0  ;;  %v1628_v49 = vpop.f32.mrb[30].mxu1 }
 0x18a   : > { %v1581_v50 = vpop.f32.mrb[31].mxu0  ;;  %v1629_v52 = vpop.f32.mrb[31].mxu1 }
 0x18b   : > { %v1457_v53 = vpack.c.bf16 %v1000_v44, %v999_v40  ;;  %v1497_v54 = vpack.c.bf16 %v1016_v45, %v1015_v41  ;;  %v930_v55 = vmul.f32 %v1579_v46, %v2170_v51  ;;  %v946_v56 = vmul.f32 %v1627_v47, %v2170_v51 }
 0x18c   : > { %v1582_v58 = vadd.f32 %v1581_v50, %v1580_v48  ;;  %v1630_v59 = vadd.f32 %v1629_v52, %v1628_v49 }
 0x18d   : > { %1509 = vst [vmem:[%s2188_s22 + $0x30] sm:$0xff] %v1457_v53   ;;  %1517 = vst [vmem:[%s2188_s22 + $0x70] sm:$0xff] %v1497_v54   ;;  %v969_v60 = vadd.f32 %v2175_v57, %v930_v55  ;;  %v985_v61 = vadd.f32 %v2175_v57, %v946_v56 }
 0x18e   : > { %v931_v62 = vmul.f32 %v1582_v58, %v2170_v51  ;;  %v947_v63 = vmul.f32 %v1630_v59, %v2170_v51 }
 0x18f   : > { %v1001_v2 = vmax.f32 %v969_v60, 0.0  ;;  %v1017_v3 = vmax.f32 %v985_v61, 0.0 }
 0x190   : > { %v970_v0 = vadd.f32 %v2175_v57, %v931_v62  ;;  %v986_v1 = vadd.f32 %v2175_v57, %v947_v63 }
 0x192   : > { %v1002_v4 = vmax.f32 %v970_v0, 0.0  ;;  %v1018_v5 = vmax.f32 %v986_v1, 0.0 }
 0x194   : > { %v1462_v51 = vpack.c.bf16 %v1002_v4, %v1001_v2  ;;  %v1502_v6 = vpack.c.bf16 %v1018_v5, %v1017_v3 }
 0x196   : > { %1510 = vst [vmem:[%s2188_s22 + $0x38] sm:$0xff] %v1462_v51   ;;  %1518 = vst [vmem:[%s2188_s22 + $0x78] sm:$0xff] %v1502_v6  }
 0x197   : > { %1861 = shalt.err (!%p1858_p5)
}
 0x198   : > { %s1862_s23 = scalar_lea.hbm %s2263_s6, 2048  ;;  %s1866_s14 = scalar_lea.hbm %s2319_s4, 16384 }
 0x199   : > { %p1863_p9 = scmp.ne.s32.totalorder %s2263_s6, %s1862_s23  ;;  %p1867_p3 = scmp.lt.u32.totalorder %s2263_s6, %s2319_s4 }
 0x19a   : > { %p1868_p7 = scmp.lt.u32.totalorder %s1866_s14, %s1862_s23  ;;  %p1870_p4 = scmp.lt.u32.totalorder %s1862_s23, %s2263_s6 }
 0x19b   : > { %p1864_p1 = pnand %p1863_p9, %p2065_p11 }
 0x19c   : > { %p1869_p13 = por %p1868_p7, %p1867_p3 }
 0x19d   : > { %p1865_p2 = pneg %p1864_p1 }
 0x19e   : > { %p1871_p6 = por %p1870_p4, %p1869_p13 }
 0x1a0   : > { %p1872_p8 = pnand %p1871_p6, %p1865_p2 }
 0x1a2   : > { %1875 = shalt.err (!%p1872_p8)
}
 0x1a3   : > { %s1943_s28 = smov 64   ;;  %s1944_s24 = smov 4  }
 0x1a4   : > { %1653 = dma.vmem_to_hbm [thread:$0]  (%p2065_p11), %s2265_s13, 2048, %s2263_s6, %s1180_s18, %s1943_s28, %s1943_s28, %s1944_s24  }
 0x1a5 PF: > { %p1670_p12 = scmp.ge.s32.totalorder %s1934_s20, 2  ;;  %s1208_s30 = sand.u32 1, %s1914_s15  }
 0x1a6   : > { %p2337_p10 = scmp.ne.s32.totalorder %s2327_s26, 0  ;;  %s1209_s9 = scalar_lea.sflag [#allocation5], %s1208_s30 }
 0x1a8   : > { %p1664_p0 = pnand %p1670_p12, %p2337_p10 }
 0x1aa   : > { %1909 = dma.done.wait (!%p1664_p0), %s1209_s9, 2048  }
 0x1ab   : > { %1911 = vsyncadd (!%p1664_p0), %s1209_s9, 4294965248  ;;  %s21_s20 = sadd.s32 1, %s1934_s20   ;;  %s2338_s15 = smov %s1918_s16 }
 0x1ac   : > { %p18_p5 = scmp.ge.s32.totalorder %s21_s20, 10   ;;  %s2339_s16 = smov %s1922_s17 }
 0x1ad   : > { %s2340_s17 = smov %s2074_s10  ;;  %s2341_s18 = smov %s1930_s19 }
 0x1ae   : > { %s2342_s19 = smov %s2344_s5  ;;  %20 = sbr.rel (!%p18_p5) target bundleno = 7 (0x7), region = 94 }
 0x1b5   :  { %1214 = vsyncpa [#allocation4], 1 }
 0x1b6   :  { %1216 = vsyncpa [#allocation4 + $0x1], 1 }
 0x1b7   :  { %1217 = vsyncpa [#allocation7], 1 }
 0x1b8   :  { %1218 = vsyncpa [#allocation5], 1 }
 0x1b9   :  { %1220 = vsyncpa [#allocation5 + $0x1], 1 }

</bundles_post_ra>
